<compile_context>
chip_gen: v7x
topology: tpu7x:2x2x1
jax: 0.10.0
libtpu: 0.0.40
codegen_flags: <defaults>
</compile_context>

<pallas_src>
import jax
import jax.numpy as jnp
from jax import lax
from jax.experimental import pallas as pl
from jax.experimental.pallas import tpu as pltpu

HIGH = jax.lax.Precision.HIGHEST


def _sigmoid(z):
    return 1.0 / (1.0 + jnp.exp(-z))


# ----------------------------------------------------------------------------
# Pallas kernel 1: pointwise (1x1) convolution as a channel matmul.
# ----------------------------------------------------------------------------
def _pointwise_conv_kernel(x_ref, w_ref, b_ref, o_ref):
    # x_ref: (1, C_in, T)   w_ref: (C_out, C_in)   b_ref: (C_out, 1)   o_ref: (1, C_out, T)
    x = x_ref[...][0].astype(jnp.float32)            # (C_in, T)
    w = w_ref[...].astype(jnp.float32)                # (C_out, C_in)
    b = b_ref[...].astype(jnp.float32)                # (C_out, 1)
    y = jnp.dot(w, x, preferred_element_type=jnp.float32) + b
    o_ref[...] = y[None].astype(o_ref.dtype)          # (1, C_out, T)


def pointwise_conv(x3, w, b, *, hw_tile_cap=8192):
    """1x1 conv.  x3: (B, C_in, HW); w: (C_out, C_in); b: (C_out,). Returns (B, C_out, HW)."""
    B, cin, hw = x3.shape
    cout = w.shape[0]
    # Lane-dense tile along H*W; full extent when small, capped multiple of 128 otherwise.
    t = hw if hw <= hw_tile_cap else hw_tile_cap
    grid = (B, pl.cdiv(hw, t))
    return pl.pallas_call(
        _pointwise_conv_kernel,
        out_shape=jax.ShapeDtypeStruct((B, cout, hw), x3.dtype),
        grid_spec=pltpu.PrefetchScalarGridSpec(
            num_scalar_prefetch=0,
            grid=grid,
            in_specs=[
                pl.BlockSpec((1, cin, t), lambda bi, ti: (bi, 0, ti)),
                pl.BlockSpec((cout, cin), lambda bi, ti: (0, 0)),
                pl.BlockSpec((cout, 1), lambda bi, ti: (0, 0)),
            ],
            out_specs=pl.BlockSpec((1, cout, t), lambda bi, ti: (bi, 0, ti)),
        ),
        compiler_params=pltpu.CompilerParams(
            dimension_semantics=("parallel", "parallel")),
    )(x3, w, b.reshape(cout, 1))


# ----------------------------------------------------------------------------
# Pallas kernel 2: per-(batch, head) channel attention with fused mask epilogue.
# ----------------------------------------------------------------------------
def _chan_attn_kernel(q_ref, k_ref, x_ref, m_ref, t_ref, o_ref):
    # q/k/x/m/o refs: (1, 1, C_head, HW);  t_ref: (1, 1, 1).
    q = q_ref[...][0, 0].astype(jnp.float32)          # (C_head, HW)
    k = k_ref[...][0, 0].astype(jnp.float32)
    xv = x_ref[...][0, 0].astype(jnp.float32)
    m = m_ref[...][0, 0].astype(jnp.float32)

    # V_MaskAttention epilogue fused in: v = x + x * sigmoid(conv5x5(BN(conv1x1(x)))).
    v = xv + xv * _sigmoid(m)

    # L2-normalize q, k along HW (lane axis). rsqrt -> EUP slot.
    # Matches F.normalize(dim=-1, eps=1e-12): sqrt(max(ss, 1e-24)) == max(||.||, 1e-12).
    qn = q * lax.rsqrt(jnp.maximum(jnp.sum(q * q, axis=-1, keepdims=True), 1e-24))
    kn = k * lax.rsqrt(jnp.maximum(jnp.sum(k * k, axis=-1, keepdims=True), 1e-24))

    temp = t_ref[...].astype(jnp.float32)[0]          # (1, 1)
    attn = lax.dot_general(qn, kn, (((1,), (1,)), ((), ())),
                           preferred_element_type=jnp.float32)   # (C_head, C_head)
    attn = attn * temp
    attn = attn - jnp.max(attn, axis=-1, keepdims=True)
    p = jnp.exp(attn)
    p = p / jnp.sum(p, axis=-1, keepdims=True)

    out = jnp.dot(p, v, preferred_element_type=jnp.float32)      # (C_head, HW)
    o_ref[...] = out[None, None].astype(o_ref.dtype)


def channel_attention(q, k, xv, m, temperature):
    """q, k, xv, m: (B, heads, C_head, HW); temperature: (heads, 1, 1)."""
    B, nh, ch, hw = q.shape
    blk = pl.BlockSpec((1, 1, ch, hw), lambda bi, hi: (bi, hi, 0, 0))
    # NOTE: one (C_head, HW) slab per grid step; tiny for these shapes. For very
    # large H*W the HW axis would need tiling with partial-sum accumulation.
    return pl.pallas_call(
        _chan_attn_kernel,
        out_shape=jax.ShapeDtypeStruct((B, nh, ch, hw), q.dtype),
        grid_spec=pltpu.PrefetchScalarGridSpec(
            num_scalar_prefetch=0,
            grid=(B, nh),
            in_specs=[blk, blk, blk, blk,
                      pl.BlockSpec((1, 1, 1), lambda bi, hi: (hi, 0, 0))],
            out_specs=blk,
        ),
        compiler_params=pltpu.CompilerParams(
            dimension_semantics=("parallel", "parallel")),
    )(q, k, xv, m, temperature)


# ----------------------------------------------------------------------------
# Spatial convolutions (plain JAX).
# ----------------------------------------------------------------------------
def _spatial_conv(x, w, padding, groups=1):
    return lax.conv_general_dilated(
        x, w, window_strides=(1, 1), padding=padding,
        dimension_numbers=("NCHW", "OIHW", "NCHW"),
        feature_group_count=groups, precision=HIGH)


# ----------------------------------------------------------------------------
# Full AttentionMs forward.
# ----------------------------------------------------------------------------
def attention_ms_forward(x, p, num_heads):
    B, C, H, W = x.shape
    hw = H * W
    ch = C // num_heads
    x3 = x.reshape(B, C, hw)

    # qkv = qkv_dwconv(qkv(x))
    qkv = pointwise_conv(x3, p["qkv_w"], p["qkv_b"])                       # Pallas
    qkv = _spatial_conv(qkv.reshape(B, 3 * C, H, W), p["dw_w"],
                        ((1, 1), (1, 1)), groups=3 * C)
    qkv = qkv + p["dw_b"][None, :, None, None]
    q = qkv[:, :C].reshape(B, num_heads, ch, hw)
    k = qkv[:, C:2 * C].reshape(B, num_heads, ch, hw)
    # Third chunk of qkv is discarded by the module: v := maskattention(x).

    # V_MaskAttention mask branch: 1x1 conv (no bias) + BatchNorm folded -> 5x5 conv.
    s = p["bn_gamma"] / jnp.sqrt(p["bn_var"] + 1e-5)
    w1_folded = p["mask_w1"] * s[:, None]
    b1_folded = p["bn_beta"] - s * p["bn_mean"]
    m = pointwise_conv(x3, w1_folded, b1_folded)                           # Pallas
    m = _spatial_conv(m.reshape(B, C, H, W), p["mask_w5"], ((2, 2), (2, 2)))

    # Fused channel attention (computes v = x + x*sigmoid(m) inside the kernel).
    out = channel_attention(q, k,
                            x.reshape(B, num_heads, ch, hw),
                            m.reshape(B, num_heads, ch, hw),
                            p["temperature"])                              # Pallas
    out = pointwise_conv(out.reshape(B, C, hw), p["proj_w"], p["proj_b"])  # Pallas
    return out.reshape(B, C, H, W)


# ----------------------------------------------------------------------------
# Pure-JAX reference mirroring the PyTorch forward.
# ----------------------------------------------------------------------------
def _reference(x, p, num_heads):
    B, C, H, W = x.shape
    hw = H * W
    ch = C // num_heads

    def conv1x1(t, w, b=None):
        y = jnp.einsum("oc,bchw->bohw", w, t, precision=HIGH)
        if b is not None:
            y = y + b[None, :, None, None]
        return y

    qkv = conv1x1(x, p["qkv_w"], p["qkv_b"])
    qkv = _spatial_conv(qkv, p["dw_w"], ((1, 1), (1, 1)), groups=3 * C)
    qkv = qkv + p["dw_b"][None, :, None, None]
    q, k = qkv[:, :C], qkv[:, C:2 * C]

    m = conv1x1(x, p["mask_w1"])
    m = ((m - p["bn_mean"][None, :, None, None])
         / jnp.sqrt(p["bn_var"][None, :, None, None] + 1e-5)
         * p["bn_gamma"][None, :, None, None] + p["bn_beta"][None, :, None, None])
    m = _spatial_conv(m, p["mask_w5"], ((2, 2), (2, 2)))
    v = x + x * _sigmoid(m)

    qr = q.reshape(B, num_heads, ch, hw)
    kr = k.reshape(B, num_heads, ch, hw)
    vr = v.reshape(B, num_heads, ch, hw)
    qn = qr / jnp.maximum(jnp.sqrt(jnp.sum(qr * qr, -1, keepdims=True)), 1e-12)
    kn = kr / jnp.maximum(jnp.sqrt(jnp.sum(kr * kr, -1, keepdims=True)), 1e-12)
    attn = jnp.einsum("bhcd,bhed->bhce", qn, kn, precision=HIGH)
    attn = attn * p["temperature"][None]
    attn = jax.nn.softmax(attn, axis=-1)
    out = jnp.einsum("bhce,bhed->bhcd", attn, vr, precision=HIGH)
    out = out.reshape(B, C, H, W)
    return conv1x1(out, p["proj_w"], p["proj_b"])


if __name__ == "__main__":
    key = jax.random.PRNGKey(0)
    keys = jax.random.split(key, 16)

    B, dim, num_heads, H, W = 2, 8, 2, 16, 16
    C3 = 3 * dim

    x = jax.random.normal(keys[0], (B, dim, H, W), dtype=jnp.float32)

    params = {
        "qkv_w": 0.2 * jax.random.normal(keys[1], (C3, dim), jnp.float32),
        "qkv_b": 0.1 * jax.random.normal(keys[2], (C3,), jnp.float32),
        "dw_w": 0.2 * jax.random.normal(keys[3], (C3, 1, 3, 3), jnp.float32),
        "dw_b": 0.1 * jax.random.normal(keys[4], (C3,), jnp.float32),
        "mask_w1": 0.2 * jax.random.normal(keys[5], (dim, dim), jnp.float32),
        "bn_gamma": 1.0 + 0.1 * jax.random.normal(keys[6], (dim,), jnp.float32),
        "bn_beta": 0.1 * jax.random.normal(keys[7], (dim,), jnp.float32),
        "bn_mean": 0.1 * jax.random.normal(keys[8], (dim,), jnp.float32),
        "bn_var": 1.0 + 0.5 * jnp.abs(jax.random.normal(keys[9], (dim,), jnp.float32)),
        "mask_w5": 0.1 * jax.random.normal(keys[10], (dim, dim, 5, 5), jnp.float32),
        "temperature": 1.0 + 0.1 * jax.random.normal(keys[11], (num_heads, 1, 1), jnp.float32),
        "proj_w": 0.2 * jax.random.normal(keys[12], (dim, dim), jnp.float32),
        "proj_b": 0.1 * jax.random.normal(keys[13], (dim,), jnp.float32),
    }

    out = attention_ms_forward(x, params, num_heads)
    out = jax.block_until_ready(out)

    ref = _reference(x, params, num_heads)
    assert out.shape == (B, dim, H, W)
    max_err = float(jnp.max(jnp.abs(out - ref)))
    assert jnp.allclose(out, ref, atol=1e-4, rtol=1e-4), f"mismatch vs reference, max abs err={max_err}"

    print("KERNEL_OK")
</pallas_src>

<mosaic_0001>
module attributes {stable_mosaic.version = 11 : i64} {
  func.func @_pointwise_conv_kernel(%arg0: i32, %arg1: i32, %arg2: memref<1x8x256xf32, #tpu.memory_space<vmem>>, %arg3: memref<24x8xf32, #tpu.memory_space<vmem>>, %arg4: memref<24x1xf32, #tpu.memory_space<vmem>>, %arg5: memref<1x24x256xf32, #tpu.memory_space<vmem>>) attributes {dimension_semantics = [#tpu.dimension_semantics<parallel>, #tpu.dimension_semantics<parallel>], iteration_bounds = array<i64: 2, 1>, scalar_prefetch = 0 : i64, scratch_operands = 0 : i64, tpu.core_type = #tpu.core_type<tc>, window_params = [{transform_indices = @transform_0, window_bounds = array<i64: 1, 8, 256>}, {pipeline_mode = #tpu.pipeline_mode<synchronous>, transform_indices = @transform_1, window_bounds = array<i64: 24, 8>}, {pipeline_mode = #tpu.pipeline_mode<synchronous>, transform_indices = @transform_2, window_bounds = array<i64: 24, 1>}, {transform_indices = @transform_3, window_bounds = array<i64: 1, 24, 256>}]} {
    %c0 = arith.constant 0 : index
    %c0_0 = arith.constant 0 : index
    %c0_1 = arith.constant 0 : index
    %0 = vector.load %arg2[%c0, %c0_0, %c0_1] : memref<1x8x256xf32, #tpu.memory_space<vmem>>, vector<1x8x256xf32>
    %1 = vector.shape_cast %0 : vector<1x8x256xf32> to vector<8x256xf32>
    %c0_2 = arith.constant 0 : index
    %c0_3 = arith.constant 0 : index
    %2 = vector.load %arg3[%c0_2, %c0_3] : memref<24x8xf32, #tpu.memory_space<vmem>>, vector<24x8xf32>
    %c0_4 = arith.constant 0 : index
    %c0_5 = arith.constant 0 : index
    %3 = vector.load %arg4[%c0_4, %c0_5] : memref<24x1xf32, #tpu.memory_space<vmem>>, vector<24x1xf32>
    %cst = arith.constant dense<0.000000e+00> : vector<24x256xf32>
    %4 = tpu.matmul %2, %1, %cst {dimension_numbers = #tpu.dot_dimension_numbers<[1], [0], [0], [1], [0, 0, 1, 1], [], []>} : vector<24x8xf32>, vector<8x256xf32>, vector<24x256xf32> -> vector<24x256xf32>
    %5 = vector.broadcast %3 : vector<24x1xf32> to vector<24x256xf32>
    %6 = arith.addf %4, %5 : vector<24x256xf32>
    %7 = vector.shape_cast %6 : vector<24x256xf32> to vector<1x24x256xf32>
    %c0_6 = arith.constant 0 : index
    %c0_7 = arith.constant 0 : index
    %c0_8 = arith.constant 0 : index
    %8 = vector.load %arg5[%c0_6, %c0_7, %c0_8] : memref<1x24x256xf32, #tpu.memory_space<vmem>>, vector<1x24x256xf32>
    tpu.vector_store %arg5[%c0_6, %c0_7, %c0_8], %7 {strides = array<i32>} : memref<1x24x256xf32, #tpu.memory_space<vmem>>, vector<1x24x256xf32>,
    return
  }
  func.func @transform_0(%arg0: i32, %arg1: i32) -> (i32, i32, i32) {
    %c0_i32 = arith.constant 0 : i32
    %c0_i32_0 = arith.constant 0 : i32
    return %arg0, %c0_i32, %arg1 : i32, i32, i32
  }
  func.func @transform_1(%arg0: i32, %arg1: i32) -> (i32, i32) {
    %c0_i32 = arith.constant 0 : i32
    %c0_i32_0 = arith.constant 0 : i32
    %c0_i32_1 = arith.constant 0 : i32
    return %c0_i32, %c0_i32_0 : i32, i32
  }
  func.func @transform_2(%arg0: i32, %arg1: i32) -> (i32, i32) {
    %c0_i32 = arith.constant 0 : i32
    %c0_i32_0 = arith.constant 0 : i32
    %c0_i32_1 = arith.constant 0 : i32
    return %c0_i32, %c0_i32_0 : i32, i32
  }
  func.func @transform_3(%arg0: i32, %arg1: i32) -> (i32, i32, i32) {
    %c0_i32 = arith.constant 0 : i32
    %c0_i32_0 = arith.constant 0 : i32
    return %arg0, %c0_i32, %arg1 : i32, i32, i32
  }
}

</mosaic_0001>

<bundles_post_ra>
// kernel: tpu_custom_call.1
= control target key start
LH: loop header
LB: loop body
LE: loop exit
PB: predicated region body
PF: predicated region fallthrough
CT: control target
= control target key end

     0   :  { %8 = vsyncpa [#allocation3], 0  ;;  %s734_s0 = inlined_call_operand.vmem [shape: f32[2,8,256], index: 0, kind: input, shape index: {}]   ;;  %s735_s1 = inlined_call_operand.vmem [shape: f32[24,8], index: 1, kind: input, shape index: {}]   ;;  %s736_s2 = inlined_call_operand.vmem [shape: f32[24,1], index: 2, kind: input, shape index: {}]   ;;  %s737_s3 = inlined_call_operand.hbm [shape: f32[2,24,256], index: 3, kind: output, shape index: {}]  }
   0x1   :  { %10 = vsyncpa [#allocation3 + $0x1], 0  ;;  %s601_s12 = smov 0   ;;  %s603_s13 = smov 0  }
   0x2   :  { %s605_s14 = smov 0   ;;  %s607_s15 = smov 0  }
   0x3   :  { %s609_s16 = smov 0   ;;  %s611_s17 = smov 0  }
   0x4 LB: > { %s417_s18 = sadd.s32 4294967295, %s574_s17   ;;  %s418_s19 = sadd.s32 4294967294, %s574_s17   ;;  %s574_s17 = sphi %s611_s17, %s16_s17   ;;  %s570_s16 = sphi %s609_s16, %s744_s16   ;;  %s566_s15 = sphi %s607_s15, %s743_s15   ;;  %s562_s14 = sphi %s605_s14, %s742_s14   ;;  %s558_s13 = sphi %s603_s13, %s741_s13   ;;  %s554_s12 = sphi %s601_s12, %s740_s12  }
   0x5   : > { %s28_s20 = sadd.s32 1, %s570_s16  ;;  %s107_s21 = sadd.s32 1, %s562_s14 }
   0x6   : > { %p30_p0 = scmp.ge.s32.totalorder %s28_s20, 2  ;;  %p117_p1 = scmp.ne.s32.totalorder %s562_s14, %s558_s13 }
   0x7   : > { %p118_p2 = scmp.eq.s32.totalorder %s417_s18, 1  ;;  %p123_p3 = scmp.ne.s32.totalorder %s558_s13, %s554_s12 }
   0x8   : > { %s746_s20 = smov (%p30_p0, %s28_s20), 0  ;;  %p124_p5 = scmp.eq.s32.totalorder %s418_s19, 1 }
   0x9   : > { %p641_p4 = por %p118_p2, %p117_p1  ;;  %s102_s23 = ssub.s32 %s570_s16, %s746_s20 }
   0xa   : > { %p421_p6 = scmp.ge.s32.totalorder %s574_s17, 1  ;;  %p105_p7 = scmp.eq.s32.totalorder %s102_s23, 0 }
   0xb   : > { %p648_p8 = por %p124_p5, %p123_p3  ;;  %p161_p9 = scmp.lt.s32.totalorder %s574_s17, 3 }
   0xc   : > { %s654_s25 = scalar_select %p105_p7, %s562_s14, %s107_s21  }
   0xd   : > { %p162_p10 = pnand %p421_p6, %p161_p9 }
   0xe   : > { %p190_p11 = scmp.lt.s32.totalorder (!%p162_p10), %s566_s15, 1  ;;  %v576_v0 = vmov (!%p162_p10), 0.0   ;;  %v205_v1 = vld [vmem:[%s736_s2] sm:$0xff] (!%p162_p10)  ;;  %v207_v2 = vld [vmem:[%s736_s2 + $0x10] sm:$0xff] (!%p162_p10)  ;;  %v577_v3 = vmov (!%p162_p10), 0   ;;  %vm223_vm0 = vcmask (!%p162_p10), 64512  }
   0xf   : > { %165 = sbr.rel (%p162_p10) target bundleno = 263 (0x107), region = 32  ;;  %297 = vmatprep.mubr.f32.mxu0 (!%p162_p10), %v576_v0  ;;  %303 = vmatprep.mubr.f32.mxu1 (!%p162_p10), %v576_v0  ;;  %v202_v4 = vld [vmem:[%s735_s1] sm:$0xff] (!%p162_p10)  ;;  %v203_v7 = vld [vmem:[%s735_s1 + $0x8] sm:$0xff] (!%p162_p10)  ;;  %v204_v9 = vld [vmem:[%s735_s1 + $0x10] sm:$0xff] (!%p162_p10)  ;;  %s186_s26 = sand.u32 (!%p162_p10), 1, %s558_s13  }
  0x10   : > { %494 = vset.pattern.permute.xlu0 (!%p162_p10), %v577_v3  ;;  %495 = vset.pattern.permute.xlu1 (!%p162_p10), %v577_v3  ;;  %v206_v8 = vld [vmem:[%s736_s2 + $0x8] sm:$0xff] (!%p162_p10)  ;;  %s433_s27 = smul.u32 (!%p162_p10), 48, %s186_s26  ;;  %s688_s6 = scalar_lea.sflag (!%p162_p10), [#allocation3], %s186_s26 }
  0x11   : > { %210 = vperm.xlu0 (!%p162_p10), %494, %v205_v1   ;;  %220 = vperm.xlu1 (!%p162_p10), %495, %v207_v2   ;;  %s434_s28 = smul.u32 (!%p162_p10), 768, %s566_s15  ;;  %s578_s8 = smov (!%p162_p10), [#allocation2]  }
  0x12   : > { %s188_s29 = scalar_lea.vmem (!%p162_p10), [#allocation2], %s433_s27  ;;  %s500_s9 = sshll.u32 (!%p162_p10), %s578_s8, 4  ;;  %s501_s9 = int_to_ptr.vmem [resolvable:$false] %s500_s9 }
  0x13   : > { %s686_s5 = scalar_lea.hbm (!%p162_p10), %s737_s3, %s434_s28  ;;  %s502_s10 = scalar_lea.vmem (!%p162_p10), %s501_s9, 1536 }
  0x15   : > { %215 = vperm.xlu0 (!%p162_p10), %494, %v206_v8  }
  0x16   : > { %s191_s30 = scalar_select %p190_p11, %s566_s15, 1 }
  0x18   : > { %s430_s4 = sshll.u32 %s191_s30, 4  ;;  %s338_s30 = sshll.u32 %s188_s29, 4  ;;  %s681_s30 = int_to_ptr.vmem [resolvable:$true] %s338_s30 }
  0x19   : > { %s197_s7 = scalar_lea.vmem %s734_s0, %s430_s4  ;;  %p503_p1 = scmp.lt.s32.totalorder %s681_s30, %s501_s9 }
  0x1a   : > { %v201_v5 = vld [vmem:[%s197_s7 + $0x8] sm:$0xff]  ;;  %v200_v6 = vld [vmem:[%s197_s7] sm:$0xff]  ;;  %s496_s7 = scalar_lea.vmem %s681_s30, 768 }
  0x1b   : > { %233 = vmatprep.subr.mxu0 %v201_v5  ;;  %431 = vmatprep.subr.mxu1 %v201_v5  ;;  %p497_p12 = scmp.ne.s32.totalorder %s681_s30, %s496_s7  ;;  %p504_p2 = scmp.lt.s32.totalorder %s502_s10, %s496_s7 }
  0x1c   : > { %234 = vmatpush1.msra.mxu0 %v200_v6  ;;  %432 = vmatpush1.msra.mxu1 %v200_v6 }
  0x1d   : > { %424 = vmatmul.mubr.msk.f32.vlgmr.msra.gmra.mrb[0].mxu0 %vm223_vm0, %v202_v4  ;;  %425 = vmatmul.mubr.msk.f32.vlgmr.msra.gmra.mrb[0].mxu1 %vm223_vm0, %v203_v7  ;;  %p498_p13 = pnand %p497_p12, %p641_p4  ;;  %p505_p3 = por %p504_p2, %p503_p1 }
  0x1e   : > { %309 = vmatprep.mubr.f32.mxu1 %v576_v0 }
  0x1f   : > { %p499_p0 = pneg %p498_p13 }
  0x21   : > { %426 = vmatmul.mubr.msk.f32.gmra.mrb[2].mxu1 %vm223_vm0, %v204_v9  ;;  %p506_p5 = pnand %p505_p3, %p499_p0 }
  0x90   : > { %v211_v10 = vpop.permute.xlu0 %210  ;;  %v221_v20 = vpop.permute.xlu1 %220 }
  0x94   : > { %v216_v11 = vpop.permute.xlu0 %215 }
  0xf0   : > { %v299_v12 = vpop.f32.mrb[0].mxu0  ;;  %v305_v13 = vpop.f32.mrb[0].mxu1 }
  0xf1   : > { %v300_v14 = vadd.f32 %v299_v12, %v211_v10  ;;  %v306_v15 = vadd.f32 %v305_v13, %v216_v11  ;;  %v301_v16 = vpop.f32.mrb[1].mxu0  ;;  %v307_v17 = vpop.f32.mrb[1].mxu1 }
  0xf2   : > { %v302_v18 = vadd.f32 %v301_v16, %v211_v10  ;;  %v308_v19 = vadd.f32 %v307_v17, %v216_v11 }
  0xf3   : > { %316 = vst [vmem:[%s188_s29] sm:$0xff] %v300_v14  ;;  %318 = vst [vmem:[%s188_s29 + $0x10] sm:$0xff] %v306_v15 }
  0xf4   : > { %317 = vst [vmem:[%s188_s29 + $0x8] sm:$0xff] %v302_v18  ;;  %319 = vst [vmem:[%s188_s29 + $0x18] sm:$0xff] %v308_v19  ;;  %v311_v21 = vpop.f32.mrb[2].mxu1 }
  0xf5   : > { %v312_v22 = vadd.f32 %v311_v21, %v221_v20  ;;  %v313_v23 = vpop.f32.mrb[3].mxu1 }
  0xf6   : > { %v314_v24 = vadd.f32 %v313_v23, %v221_v20 }
  0xf7   : > { %320 = vst [vmem:[%s188_s29 + $0x20] sm:$0xff] %v312_v22 }
  0xf8   : > { %321 = vst [vmem:[%s188_s29 + $0x28] sm:$0xff] %v314_v24 }
  0xf9   : > { %509 = shalt.err (!%p506_p5)
}
  0xfa   : > { %s510_s11 = scalar_lea.hbm %s686_s5, 768  ;;  %s514_s21 = scalar_lea.hbm %s737_s3, 1536 }
  0xfb   : > { %p511_p6 = scmp.ne.s32.totalorder %s686_s5, %s510_s11  ;;  %p515_p10 = scmp.lt.u32.totalorder %s686_s5, %s737_s3 }
  0xfc   : > { %p516_p11 = scmp.lt.u32.totalorder %s514_s21, %s510_s11  ;;  %p518_p13 = scmp.lt.u32.totalorder %s510_s11, %s686_s5 }
  0xfd   : > { %p512_p7 = pnand %p511_p6, %p641_p4 }
  0xfe   : > { %p517_p12 = por %p516_p11, %p515_p10 }
  0xff   : > { %p513_p9 = pneg %p512_p7 }
 0x100   : > { %p519_p0 = por %p518_p13, %p517_p12 }
 0x102   : > { %p520_p1 = pnand %p519_p0, %p513_p9 }
 0x104   : > { %523 = shalt.err (!%p520_p1)
}
 0x105   : > { %s579_s27 = smov 256   ;;  %s580_s28 = smov 16  }
 0x106   : > { %435 = dma.vmem_to_hbm [thread:$0]  (%p641_p4), %s681_s30, 768, %s686_s5, %s688_s6, %s579_s27, %s579_s27, %s580_s28  }
 0x107 PF: > { %p441_p2 = scmp.ge.s32.totalorder %s574_s17, 2  ;;  %s353_s29 = sand.u32 1, %s554_s12  }
 0x108   : > { %s354_s4 = scalar_lea.sflag [#allocation3], %s353_s29 }
 0x109   : > { %p438_p3 = pnand %p441_p2, %p648_p8 }
 0x10b   : > { %549 = dma.done.wait (!%p438_p3), %s354_s4, 768  }
 0x10c   : > { %551 = vsyncadd (!%p438_p3), %s354_s4, 4294966528  ;;  %s16_s17 = sadd.s32 1, %s574_s17   ;;  %s740_s12 = smov %s558_s13 }
 0x10d   : > { %p13_p5 = scmp.ge.s32.totalorder %s16_s17, 4   ;;  %s741_s13 = smov %s562_s14 }
 0x10e   : > { %s742_s14 = smov %s654_s25  ;;  %s743_s15 = smov %s570_s16 }
 0x10f   : > { %s744_s16 = smov %s746_s20  ;;  %15 = sbr.rel (!%p13_p5) target bundleno = 4 (0x4), region = 67 }
 0x116   :  { %359 = vsyncpa [#allocation3], 1 }
 0x117   :  { %361 = vsyncpa [#allocation3 + $0x1], 1 }

</bundles_post_ra>
